<compile_context>
chip_gen: v6e
topology: v6e:2x2x1
jax: 0.10.0
libtpu: 0.0.40
codegen_flags: <defaults>
</compile_context>

<pallas_src>
import functools

import jax
import jax.numpy as jnp
from jax.experimental import pallas as pl
from jax.experimental.pallas import tpu as pltpu


def _tv_kernel(x_ref, out_ref, acc_ref, *, H, W, B, tv_weight):
    i = pl.program_id(0)

    @pl.when(i == 0)
    def _init():
        acc_ref[...] = jnp.zeros_like(acc_ref)

    x = x_ref[...].astype(jnp.float32)                  # (rb, H*W) lane-dense
    rb, hw = x.shape
    lane = jax.lax.broadcasted_iota(jnp.int32, (rb, hw), 1)

    inv_count_h = 1.0 / ((H - 1) * W)                   # reference: (H-1)*W
    inv_count_w = 1.0 / (H * (W - 1))                   # reference: H*(W-1)

    # Width diffs: x[..., w+1] - x[..., w]  <=>  x_flat[i+1] - x_flat[i],
    # valid where (i % W) != W-1.  Shift on XLU, mask/square on VPU.
    dw = pltpu.roll(x, hw - 1, 1) - x
    dw = jnp.where((lane % W) != (W - 1), dw, 0.0)

    # Height diffs: x[h+1, w] - x[h, w]  <=>  x_flat[i+W] - x_flat[i],
    # valid where i < (H-1)*W.
    dh = pltpu.roll(x, hw - W, 1) - x
    dh = jnp.where(lane < (H - 1) * W, dh, 0.0)

    # Fuse both normalized terms; accumulate per-lane partial sums (sublane
    # reduce only), deferring the cross-lane reduction to the final step.
    contrib = dh * dh * inv_count_h + dw * dw * inv_count_w
    acc_ref[...] += jnp.sum(contrib, axis=0, keepdims=True)

    @pl.when(i == pl.num_programs(0) - 1)
    def _finalize():
        total = jnp.sum(acc_ref[...], keepdims=True)    # (1, 1)
        out_ref[...] = (total * (tv_weight * 2.0 / B)).astype(jnp.float32)


def _pick_row_block(rows, hw, bytes_per_elem=4, budget_bytes=4 * 1024 * 1024):
    """Largest multiple-of-8 row count that divides `rows` and fits the budget."""
    if rows % 8 != 0:
        return rows                                     # small/odd case: whole array
    best = 8
    r = 8
    while r <= rows:
        if rows % r == 0 and r * hw * bytes_per_elem <= budget_bytes:
            best = r
        r += 8
    return best


def tv_loss(x, tv_weight=1.0):
    """Pallas equivalent of L_TV(TVLoss_weight=tv_weight)(x) for NCHW x."""
    B, C, H, W = x.shape
    hw = H * W
    rows = B * C
    x2 = x.reshape(rows, hw)                            # lane-dense view (free)

    rb = _pick_row_block(rows, hw, jnp.dtype(x.dtype).itemsize)
    grid = (rows // rb,)

    kernel = functools.partial(_tv_kernel, H=H, W=W, B=B,
                               tv_weight=float(tv_weight))

    out = pl.pallas_call(
        kernel,
        out_shape=jax.ShapeDtypeStruct((1, 1), jnp.float32),
        grid_spec=pltpu.PrefetchScalarGridSpec(
            num_scalar_prefetch=0,
            grid=grid,
            in_specs=[pl.BlockSpec((rb, hw), lambda i: (i, 0))],
            out_specs=pl.BlockSpec((1, 1), lambda i: (0, 0)),
            scratch_shapes=[pltpu.VMEM((1, hw), jnp.float32)],
        ),
        compiler_params=pltpu.CompilerParams(
            dimension_semantics=("arbitrary",),         # reduction axis (carried acc)
            vmem_limit_bytes=32 * 1024 * 1024,
        ),
    )(x2)
    return out[0, 0]


def _tv_loss_ref(x, tv_weight=1.0):
    """Pure-JAX reference matching the PyTorch L_TV module."""
    B, _, H, W = x.shape
    x = x.astype(jnp.float32)
    h_tv = jnp.sum((x[:, :, 1:, :] - x[:, :, :-1, :]) ** 2)
    w_tv = jnp.sum((x[:, :, :, 1:] - x[:, :, :, :-1]) ** 2)
    count_h = (H - 1) * W
    count_w = H * (W - 1)
    return tv_weight * 2.0 * (h_tv / count_h + w_tv / count_w) / B


if __name__ == "__main__":
    key = jax.random.PRNGKey(0)
    B, C, H, W = 2, 4, 16, 16
    x = jax.random.uniform(key, (B, C, H, W), jnp.float32, minval=-1.0, maxval=1.0)

    out = tv_loss(x)
    jax.block_until_ready(out)

    ref = _tv_loss_ref(x)
    assert abs(float(out) - float(ref)) <= 1e-4 * max(1.0, abs(float(ref))), \
        (float(out), float(ref))
    print("KERNEL_OK")
</pallas_src>

<mosaic_0001>
module attributes {stable_mosaic.version = 11 : i64} {
  func.func @_tv_kernel(%arg0: i32, %arg1: memref<8x256xf32, #tpu.memory_space<vmem>>, %arg2: memref<1x1xf32, #tpu.memory_space<vmem>>, %arg3: memref<1x256xf32, #tpu.memory_space<vmem>>) attributes {dimension_semantics = [#tpu.dimension_semantics<arbitrary>], iteration_bounds = array<i64: 1>, scalar_prefetch = 0 : i64, scratch_operands = 1 : i64, tpu.core_type = #tpu.core_type<tc>, window_params = [{transform_indices = @transform_0, window_bounds = array<i64: 8, 256>}, {pipeline_mode = #tpu.pipeline_mode<synchronous>, transform_indices = @transform_1, window_bounds = array<i64: 1, 1>}]} {
    %c0_i32 = arith.constant 0 : i32
    %0 = arith.cmpi eq, %arg0, %c0_i32 : i32
    %1 = arith.extui %0 : i1 to i32
    %c0_i32_0 = arith.constant 0 : i32
    %2 = arith.cmpi ne, %1, %c0_i32_0 : i32
    scf.if %2 {
      %cst_17 = arith.constant 0.000000e+00 : f32
      %48 = vector.broadcast %cst_17 : f32 to vector<1x256xf32>
      %c0_18 = arith.constant 0 : index
      %c0_19 = arith.constant 0 : index
      %49 = vector.load %arg3[%c0_18, %c0_19] : memref<1x256xf32, #tpu.memory_space<vmem>>, vector<1x256xf32>
      tpu.vector_store %arg3[%c0_18, %c0_19], %48 {strides = array<i32>} : memref<1x256xf32, #tpu.memory_space<vmem>>, vector<1x256xf32>,
    } else {
    }
    %c0 = arith.constant 0 : index
    %c0_1 = arith.constant 0 : index
    %3 = vector.load %arg1[%c0, %c0_1] : memref<8x256xf32, #tpu.memory_space<vmem>>, vector<8x256xf32>
    %4 = tpu.iota {dimensions = array<i32: 1>} : vector<8x256xi32>
    %c255_i32 = arith.constant 255 : i32
    %5 = tpu.dynamic_rotate %3 by %c255_i32 dim 1 : vector<8x256xf32>, i32 -> vector<8x256xf32>
    %6 = arith.subf %5, %3 : vector<8x256xf32>
    %c16_i32 = arith.constant 16 : i32
    %c0_i32_2 = arith.constant 0 : i32
    %7 = arith.cmpi eq, %c16_i32, %c0_i32_2 : i32
    %c1_i32 = arith.constant 1 : i32
    %8 = arith.select %7, %c1_i32, %c16_i32 : i32
    %9 = vector.broadcast %8 : i32 to vector<8x256xi32>
    %10 = arith.remsi %4, %9 : vector<8x256xi32>
    %c0_i32_3 = arith.constant 0 : i32
    %11 = vector.broadcast %c0_i32_3 : i32 to vector<8x256xi32>
    %12 = arith.cmpi ne, %10, %11 : vector<8x256xi32>
    %c0_i32_4 = arith.constant 0 : i32
    %13 = vector.broadcast %c0_i32_4 : i32 to vector<8x256xi32>
    %14 = arith.cmpi slt, %10, %13 : vector<8x256xi32>
    %c0_i32_5 = arith.constant 0 : i32
    %15 = arith.cmpi slt, %8, %c0_i32_5 : i32
    %16 = vector.broadcast %15 : i1 to vector<8x256xi1>
    %17 = vector.broadcast %16 : vector<8x256xi1> to vector<8x256xi1>
    %18 = arith.xori %14, %17 : vector<8x256xi1>
    %19 = arith.andi %18, %12 : vector<8x256xi1>
    %20 = vector.broadcast %8 : i32 to vector<8x256xi32>
    %21 = arith.addi %10, %20 : vector<8x256xi32>
    %22 = arith.select %19, %21, %10 : vector<8x256xi1>, vector<8x256xi32>
    %c15_i32 = arith.constant 15 : i32
    %23 = vector.broadcast %c15_i32 : i32 to vector<8x256xi32>
    %24 = arith.cmpi ne, %22, %23 : vector<8x256xi32>
    %cst = arith.constant 0.000000e+00 : f32
    %25 = vector.broadcast %cst : f32 to vector<8x256xf32>
    %26 = arith.select %24, %6, %25 : vector<8x256xi1>, vector<8x256xf32>
    %c240_i32 = arith.constant 240 : i32
    %27 = tpu.dynamic_rotate %3 by %c240_i32 dim 1 : vector<8x256xf32>, i32 -> vector<8x256xf32>
    %28 = arith.subf %27, %3 : vector<8x256xf32>
    %c240_i32_6 = arith.constant 240 : i32
    %29 = vector.broadcast %c240_i32_6 : i32 to vector<8x256xi32>
    %30 = arith.cmpi slt, %4, %29 : vector<8x256xi32>
    %cst_7 = arith.constant 0.000000e+00 : f32
    %31 = vector.broadcast %cst_7 : f32 to vector<8x256xf32>
    %32 = arith.select %30, %28, %31 : vector<8x256xi1>, vector<8x256xf32>
    %33 = arith.mulf %32, %32 : vector<8x256xf32>
    %cst_8 = arith.constant 0.00416666688 : f32
    %34 = vector.broadcast %cst_8 : f32 to vector<8x256xf32>
    %35 = arith.mulf %33, %34 : vector<8x256xf32>
    %36 = arith.mulf %26, %26 : vector<8x256xf32>
    %cst_9 = arith.constant 0.00416666688 : f32
    %37 = vector.broadcast %cst_9 : f32 to vector<8x256xf32>
    %38 = arith.mulf %36, %37 : vector<8x256xf32>
    %39 = arith.addf %35, %38 : vector<8x256xf32>
    %c0_10 = arith.constant 0 : index
    %c0_11 = arith.constant 0 : index
    %40 = vector.load %arg3[%c0_10, %c0_11] : memref<1x256xf32, #tpu.memory_space<vmem>>, vector<1x256xf32>
    %cst_12 = arith.constant dense<0.000000e+00> : vector<256xf32>
    %41 = vector.multi_reduction <add>, %39, %cst_12 [0] : vector<8x256xf32> to vector<256xf32>
    %42 = vector.shape_cast %41 : vector<256xf32> to vector<1x256xf32>
    %43 = arith.addf %40, %42 : vector<1x256xf32>
    %c0_13 = arith.constant 0 : index
    %c0_14 = arith.constant 0 : index
    %44 = vector.load %arg3[%c0_13, %c0_14] : memref<1x256xf32, #tpu.memory_space<vmem>>, vector<1x256xf32>
    tpu.vector_store %arg3[%c0_13, %c0_14], %43 {strides = array<i32>} : memref<1x256xf32, #tpu.memory_space<vmem>>, vector<1x256xf32>,
    %c0_i32_15 = arith.constant 0 : i32
    %45 = arith.cmpi eq, %arg0, %c0_i32_15 : i32
    %46 = arith.extui %45 : i1 to i32
    %c0_i32_16 = arith.constant 0 : i32
    %47 = arith.cmpi ne, %46, %c0_i32_16 : i32
    scf.if %47 {
      %c0_17 = arith.constant 0 : index
      %c0_18 = arith.constant 0 : index
      %48 = vector.load %arg3[%c0_17, %c0_18] : memref<1x256xf32, #tpu.memory_space<vmem>>, vector<1x256xf32>
      %49 = vector.shape_cast %48 : vector<1x256xf32> to vector<1x1x256xf32>
      %cst_19 = arith.constant dense<0.000000e+00> : vector<1xf32>
      %50 = vector.multi_reduction <add>, %49, %cst_19 [1, 2] : vector<1x1x256xf32> to vector<1xf32>
      %51 = vector.shape_cast %50 : vector<1xf32> to vector<1x1x1xf32>
      %52 = vector.extract %51[0, 0, 0] : f32 from vector<1x1x1xf32>
      %53 = vector.broadcast %52 : f32 to vector<1x1xf32>
      %cst_20 = arith.constant 1.000000e+00 : f32
      %54 = vector.broadcast %cst_20 : f32 to vector<1x1xf32>
      %55 = arith.mulf %53, %54 : vector<1x1xf32>
      %c0_21 = arith.constant 0 : index
      %c0_22 = arith.constant 0 : index
      %56 = vector.load %arg2[%c0_21, %c0_22] : memref<1x1xf32, #tpu.memory_space<vmem>>, vector<1x1xf32>
      tpu.vector_store %arg2[%c0_21, %c0_22], %55 {strides = array<i32>} : memref<1x1xf32, #tpu.memory_space<vmem>>, vector<1x1xf32>,
    } else {
    }
    return
  }
  func.func @transform_0(%arg0: i32) -> (i32, i32) {
    %c0_i32 = arith.constant 0 : i32
    %c0_i32_0 = arith.constant 0 : i32
    return %arg0, %c0_i32 : i32, i32
  }
  func.func @transform_1(%arg0: i32) -> (i32, i32) {
    %c0_i32 = arith.constant 0 : i32
    %c0_i32_0 = arith.constant 0 : i32
    %c0_i32_1 = arith.constant 0 : i32
    return %c0_i32, %c0_i32_0 : i32, i32
  }
}

</mosaic_0001>

<bundles_post_ra>
// kernel: tpu_custom_call.1
= control target key start
LH: loop header
LB: loop body
LE: loop exit
PB: predicated region body
PF: predicated region fallthrough
CT: control target
= control target key end

     0   :  { %6 = vsyncpa [#allocation4], 0  ;;  %s260_s0 = inlined_call_operand.hbm [shape: f32[8,256], index: 0, kind: input, shape index: {}]   ;;  %s261_s1 = inlined_call_operand.hbm [shape: f32[1,1], index: 1, kind: output, shape index: {}]  }
   0x1   :  { %7 = vsyncpa [#allocation5], 0  ;;  %s230_s6 = smov [#allocation3]  }
   0x2   :  { %s14_s7 = sshll.u32 %s230_s6, 4  ;;  %s15_s7 = int_to_ptr.vmem [resolvable:$true] %s14_s7 }
   0x3   :  { %s194_s8 = scalar_lea.vmem %s15_s7, 256  ;;  %p199_p1 = scmp.lt.s32.totalorder %s15_s7, %s15_s7 }
   0x4   :  { %p195_p0 = scmp.ne.s32.totalorder %s15_s7, %s194_s8  ;;  %p200_p2 = scmp.lt.s32.totalorder %s194_s8, %s194_s8 }
   0x6   :  { %p201_p3 = por %p200_p2, %p199_p1 }
   0x8   :  { %p202_p4 = pnand %p201_p3, %p195_p0 }
   0xa   :  { %205 = shalt.err (!%p202_p4)
}
   0xb   :  { %17 = dma.hbm_to_vmem [thread:$0]  %s260_s0, 256, %s15_s7, [#allocation4]  }
   0xc   :  { %226 = dma.done.wait [#allocation4], 256  }
   0xd   :  { %227 = vsyncadd [#allocation4], 4294967040  ;;  %v25_v0 = vlaneseq  ;;  %v231_v2 = vmov 0.0   ;;  %v30_v3 = vld [vmem:[#allocation3] sm:$0xff]  ;;  %s232_s11 = smov 112   ;;  %s233_s12 = smov 127  }
   0xe   :  { %72 = vrot.lane.b32.xlu1 %v30_v3, %s232_s11  ;;  %35 = vrot.lane.b32.xlu0 %v30_v3, %s233_s12  ;;  %v31_v4 = vld [vmem:[#allocation3 + $0x8] sm:$0xff]  ;;  %v234_v38 = vmov 1966171168   ;;  %vm147_vm6 = vcmask 1040384   ;;  %s235_s0 = smov [#allocation6]   ;;  %vm161_vm7 = vcmask 0  }
   0xf   :  { %vm249_vm0 = vcmp.lt.s32.totalorder %v25_v0, 256  ;;  %v33_v5 = vand.u32 127, %v25_v0  ;;  %v112_v39 = vunpack.c.l.s4 %v234_v38  ;;  %v115_v45 = vshrl.u32 %v25_v0, 7  ;;  %s169_s13 = sshll.u32 %s235_s0, 4  ;;  %s170_s13 = int_to_ptr.vmem [resolvable:$true] %s169_s13 }
  0x10   :  { %29 = vst.msk [vmem:[#allocation2] sm:$0x3] %vm249_vm0, %v231_v2  ;;  %s206_s15 = scalar_lea.vmem %s170_s13, 16  ;;  %s210_s16 = scalar_lea.vmem %s170_s13, 32 }
  0x11   :  { %v34_v6 = vadd.s32 128, %v33_v5  ;;  %v48_v9 = vand.u32 15, %v33_v5  ;;  %vm76_vm1 = vcmp.lt.s32.totalorder %v33_v5, 112  ;;  %vm39_vm2 = vcmp.lt.s32.totalorder %v33_v5, 127  ;;  %p207_p5 = scmp.ne.s32.totalorder %s170_s13, %s206_s15  ;;  %p211_p6 = scmp.lt.s32.totalorder %s170_s13, %s170_s13 }
  0x12   :  { %74 = vrot.lane.b32.xlu1 %v31_v4, %s232_s11  ;;  %37 = vrot.lane.b32.xlu0 %v31_v4, %s233_s12  ;;  %v113_v44 = vunpack.c.0.s8 %v112_v39  ;;  %v139_v56 = vsub.s32 0, %v115_v45  ;;  %v143_v57 = vsub.s32 1, %v115_v45  ;;  %p212_p7 = scmp.lt.s32.totalorder %s210_s16, %s206_s15 }
  0x13   :  { %v55_v10 = vand.u32 15, %v34_v6  ;;  %vm82_vm3 = vcmp.lt.s32.totalorder %v34_v6, 240  ;;  %vm68_vm4 = vcmp.ne.s32.totalorder %v48_v9, 15 }
  0x14   :  { %v116_v50 = vsub.s32 %v113_v44, %v115_v45  ;;  %p213_p8 = por %p212_p7, %p211_p6 }
  0x15   :  { %vm69_vm5 = vcmp.ne.s32.totalorder %v55_v10, 15 }
  0x16   :  { %p214_p9 = pnand %p213_p8, %p207_p5 }
  0x17   :  { %v95_v53 = vld [vmem:[#allocation2] sm:$0x3] }
  0x80   :  { %v73_v7 = vpop.permute.xlu1 %72  ;;  %v36_v8 = vpop.permute.xlu0 %35 }
  0x84   :  { %v75_v11 = vpop.permute.xlu1 %74  ;;  %v38_v12 = vpop.permute.xlu0 %37 }
  0x85   :  { %v77_v13 = vsel %vm76_vm1, %v73_v7, %v75_v11  ;;  %v78_v14 = vsel %vm76_vm1, %v75_v11, %v73_v7  ;;  %v40_v15 = vsel %vm39_vm2, %v36_v8, %v38_v12  ;;  %v41_v16 = vsel %vm39_vm2, %v38_v12, %v36_v8 }
  0x86   :  { %v79_v17 = vsub.f32 %v77_v13, %v30_v3  ;;  %v80_v18 = vsub.f32 %v78_v14, %v31_v4  ;;  %v42_v19 = vsub.f32 %v40_v15, %v30_v3  ;;  %v43_v20 = vsub.f32 %v41_v16, %v31_v4 }
  0x88   :  { %v84_v21 = vsel %vm82_vm3, %v80_v18, 0.0  ;;  %v85_v22 = vmul.f32 %v79_v17, %v79_v17  ;;  %v70_v23 = vsel %vm68_vm4, %v42_v19, 0.0  ;;  %v71_v24 = vsel %vm69_vm5, %v43_v20, 0.0 }
  0x89   :  { %v86_v25 = vmul.f32 %v84_v21, %v84_v21  ;;  %v89_v26 = vmul.f32 %v70_v23, %v70_v23  ;;  %v90_v27 = vmul.f32 %v71_v24, %v71_v24 }
  0x8a   :  { %v87_v28 = vmul.f32 0.004166667, %v85_v22 }
  0x8b   :  { %v88_v29 = vmul.f32 0.004166667, %v86_v25  ;;  %v91_v30 = vmul.f32 0.004166667, %v89_v26  ;;  %v92_v31 = vmul.f32 0.004166667, %v90_v27 }
  0x8d   :  { %v93_v32 = vadd.f32 %v91_v30, %v87_v28  ;;  %v94_v33 = vadd.f32 %v92_v31, %v88_v29 }
  0x8f   :  { %v96_v34 = vrot.slane %v93_v32, 4  ;;  %v102_v35 = vrot.slane %v94_v33, 4 }
  0x91   :  { %v97_v36 = vadd.f32 %v96_v34, %v93_v32  ;;  %v103_v37 = vadd.f32 %v102_v35, %v94_v33 }
  0x93   :  { %v98_v40 = vrot.slane %v97_v36, 2  ;;  %v104_v41 = vrot.slane %v103_v37, 2 }
  0x95   :  { %v99_v42 = vadd.f32 %v98_v40, %v97_v36  ;;  %v105_v43 = vadd.f32 %v104_v41, %v103_v37 }
  0x97   :  { %v100_v46 = vrot.slane %v99_v42, 1  ;;  %v106_v47 = vrot.slane %v105_v43, 1 }
  0x99   :  { %v101_v48 = vadd.f32 %v100_v46, %v99_v42  ;;  %v107_v49 = vadd.f32 %v106_v47, %v105_v43 }
  0x9b   :  { %v110_v51 = vcombine.low %v101_v48, %v107_v49 }
  0x9d   :  { %v117_v52 = vrot.slane %v110_v51, %v116_v50 }
  0x9f   :  { %v124_v54 = vrot.slane %v117_v52, %v116_v50 }
  0xa1   :  { %v126_v55 = vadd.f32 %v124_v54, %v95_v53 }
  0xa3   :  { %131 = vst.msk [vmem:[#allocation2] sm:$0x3] %vm249_vm0, %v126_v55 }
  0xaa   :  { %v135_v58 = vld [vmem:[#allocation2] sm:$0x3] }
  0xab   :  { %v140_v59 = vrot.slane %v135_v58, %v139_v56  ;;  %v144_v60 = vrot.slane %v135_v58, %v143_v57 }
  0xad   :  { %v148_v61 = vsel %vm147_vm6, %v140_v59, 0.0  ;;  %v149_v62 = vsel %vm147_vm6, %v144_v60, 0.0 }
  0xae   :  { %v150_v63 = vadd.f32 %v149_v62, %v148_v61 }
  0xb0   :  { %151 = vadd.xlane.f32.xlu0 %v150_v63 }
 0x139   :  { %v152_v0 = vpop.xlane.xlu0 %151 }
 0x13a   :  { %v153_v2 = vrot.slane %v152_v0, 4 }
 0x13c   :  { %v154_v3 = vadd.f32 %v153_v2, %v152_v0 }
 0x13e   :  { %v155_v4 = vrot.slane %v154_v3, 2 }
 0x140   :  { %v156_v5 = vadd.f32 %v155_v4, %v154_v3 }
 0x142   :  { %v157_v6 = vrot.slane %v156_v5, 1 }
 0x144   :  { %v158_v7 = vadd.f32 %v157_v6, %v156_v5 }
 0x146   :  { %178 = vpush %v158_v7 }
 0x177   :  { %s179_s14 = spop %178 }
 0x178   :  { %v160_v1 = vstv %s179_s14 }
 0x179   :  { %162 = vst.msk [vmem:[#allocation6] sm:$0x1] %vm161_vm7, %v160_v1 }
 0x17a   :  { %217 = shalt.err (!%p214_p9)
}
 0x17b   :  { %172 = dma.vmem_to_hbm [thread:$0]  %s170_s13, 16, %s261_s1, [#allocation5]  }
 0x17c   :  { %228 = dma.done.wait [#allocation5], 16  }
 0x17d   :  { %229 = vsyncadd [#allocation5], 4294967280 }
 0x17e   :  { %176 = vsyncpa [#allocation4], 1 }
 0x17f   :  { %177 = vsyncpa [#allocation5], 1 }

</bundles_post_ra>
